<compile_context>
chip_gen: v7x
topology: tpu7x:2x2x1
jax: 0.10.0
libtpu: 0.0.40
codegen_flags: <defaults>
</compile_context>

<pallas_src>
import functools

import jax
import jax.numpy as jnp
from jax.experimental import pallas as pl
from jax.experimental.pallas import tpu as pltpu

GAMMA = 2  # integer power -> computed as q*q (exact, VPU-only, no pow/log/exp)

# Target size of one logits block in its *feed* dtype. 4 MiB keeps the
# ~0.35us per-grid-step overhead a small fraction of the block DMA time on
# every generation while the conservative temp budget below stays < 48 MiB.
_TARGET_BLOCK_BYTES = 4 * 1024 * 1024
# Planned VMEM budget: 2x block (double buffer) + f32 upcast + ~3x f32 temps.
_VMEM_LIMIT_BYTES = 48 * 1024 * 1024
_MAX_TILE_ROWS = 4096


def _focal_loss_kernel(logit_ref, label_ref, out_ref, *, b_actual):
    i = pl.program_id(0)

    logits = logit_ref[...].astype(jnp.float32)               # (Bt, C) f32
    labels = label_ref[...]                                    # (Bt, 1) int32
    bt, c = logits.shape

    # true-class logit via lane-iota compare + select (no one-hot matmul)
    col = jax.lax.broadcasted_iota(jnp.int32, (bt, c), 1)
    hit = col == labels                                        # (Bt, C) bool
    true_logit = jnp.sum(jnp.where(hit, logits, 0.0), axis=-1, keepdims=True)

    # numerically stable log-sum-exp -> per-row cross entropy
    m = jnp.max(logits, axis=-1, keepdims=True)                # (Bt, 1)
    lse = m + jnp.log(jnp.sum(jnp.exp(logits - m), axis=-1, keepdims=True))
    ce = jnp.maximum(lse - true_logit, 0.0)                    # clamp tiny negatives

    # focal modulation: (1 - exp(-ce))**2 * ce, as q*q (no pow -> no log/exp)
    q = 1.0 - jnp.exp(-ce)
    loss = q * q * ce                                          # (Bt, 1)

    # Mask rows past the real batch. The last grid step may be a partial block
    # whose out-of-bounds rows read garbage (possibly NaN/inf); jnp.where still
    # selects exactly 0.0 for them, so nothing propagates into the sum.
    # Keep this as the LAST op before the store.
    row = i * bt + jax.lax.broadcasted_iota(jnp.int32, (bt, 1), 0)
    loss = jnp.where(row < b_actual, loss, 0.0)

    # lane-dense per-tile partial sum (unmasked vst); wrapper finishes the mean
    out_ref[...] = jnp.broadcast_to(jnp.sum(loss), (1, 128))


def _pick_b_tile(b, c, dtype):
    """Rows per grid step: ~_TARGET_BLOCK_BYTES of logits in the feed dtype."""
    itemsize = jnp.dtype(dtype).itemsize
    # Sub-32-bit dtypes pack along sublanes: round rows to the packed multiple
    # (16 for bf16, 8 for f32).
    rounding = 8 * max(1, 4 // max(1, itemsize))
    rows = _TARGET_BLOCK_BYTES // max(1, c * itemsize)
    rows = max(rounding, min(_MAX_TILE_ROWS, (int(rows) // rounding) * rounding))
    # don't over-size the tile for tiny batches
    rows = min(rows, ((b + rounding - 1) // rounding) * rounding)
    return int(rows)


def focal_loss(logit, label, *, feed_dtype=jnp.bfloat16):
    """logit: (B, ...) flattened to (B, C); label: (B,) integer class ids.

    feed_dtype: dtype the logits are streamed over HBM in (the kernel upcasts
    to f32 for all LSE math). bf16 halves HBM traffic for this bandwidth-bound
    kernel; pass feed_dtype=None to keep the caller's dtype bit-exactly.
    """
    b = logit.shape[0]
    logit2d = logit.reshape(b, -1)                             # (B, C)
    if feed_dtype is not None and logit2d.dtype != jnp.dtype(feed_dtype):
        logit2d = logit2d.astype(feed_dtype)
    c = logit2d.shape[1]
    label2d = label.astype(jnp.int32).reshape(b, 1)            # (B, 1)

    b_tile = _pick_b_tile(b, c, logit2d.dtype)
    num_tiles = pl.cdiv(b, b_tile)
    # NOTE: no jnp.pad of the logits -- padding would materialize a full
    # (B_pad, C) copy in HBM (extra full read + write). The last partial block
    # is handled by Pallas and its garbage rows are masked inside the kernel.

    partials = pl.pallas_call(
        functools.partial(_focal_loss_kernel, b_actual=b),
        out_shape=jax.ShapeDtypeStruct((1, num_tiles * 128), jnp.float32),
        grid=(num_tiles,),
        in_specs=[
            pl.BlockSpec((b_tile, c), lambda i: (i, 0)),
            # Tiny per-step label DMA; kept as a VMEM block since the
            # iota-compare consumes labels as a vector (not worth SMEM).
            pl.BlockSpec((b_tile, 1), lambda i: (i, 0)),
        ],
        out_specs=pl.BlockSpec((1, 128), lambda i: (0, i)),
        compiler_params=pltpu.CompilerParams(
            # "parallel" lets the two v7x TensorCores split the batch axis;
            # neutral on single-TC v5e/v6e.
            dimension_semantics=("parallel",),
            vmem_limit_bytes=_VMEM_LIMIT_BYTES,
        ),
    )(logit2d, label2d)

    # each tile broadcast its partial across 128 lanes; take lane 0 of each
    total = jnp.sum(partials[0, ::128])
    return total / jnp.float32(b)


def focal_loss_ref(logit, label):
    b = logit.shape[0]
    x = logit.reshape(b, -1).astype(jnp.float32)
    ce = -jax.nn.log_softmax(x, axis=-1)[jnp.arange(b), label]
    return jnp.mean((1.0 - jnp.exp(-ce)) ** GAMMA * ce)


if __name__ == "__main__":
    key = jax.random.PRNGKey(0)
    k1, k2 = jax.random.split(key)
    # NCHW-style logits, flattened to (B, C*H*W) classes as in the PyTorch forward
    logit = jax.random.normal(k1, (2, 4, 16, 16), dtype=jnp.float32)
    num_classes = 4 * 16 * 16
    label = jax.random.randint(k2, (2,), 0, num_classes, dtype=jnp.int32)

    # Default path: bf16 HBM feed. Validate the kernel math exactly against a
    # reference computed on the same bf16-quantized logits (tight tolerance),
    # and sanity-check against the full-f32 reference (bf16 rounding only).
    out_bf16 = focal_loss(logit, label)
    jax.block_until_ready(out_bf16)
    ref_q = focal_loss_ref(logit.astype(jnp.bfloat16).astype(jnp.float32), label)
    ref_f32 = focal_loss_ref(logit, label)
    assert jnp.allclose(out_bf16, ref_q, rtol=1e-4, atol=1e-4), (out_bf16, ref_q)
    assert jnp.allclose(out_bf16, ref_f32, rtol=2e-2, atol=2e-2), (out_bf16, ref_f32)

    # Exact-dtype path (no downcast) matches the f32 reference tightly.
    out_f32 = focal_loss(logit, label, feed_dtype=None)
    jax.block_until_ready(out_f32)
    assert jnp.allclose(out_f32, ref_f32, rtol=1e-5, atol=1e-5), (out_f32, ref_f32)

    print("KERNEL_OK")
</pallas_src>

<mosaic_0001>
module attributes {stable_mosaic.version = 11 : i64} {
  func.func @_focal_loss_kernel(%arg0: i32, %arg1: memref<16x1024xbf16, #tpu.memory_space<vmem>>, %arg2: memref<16x1xi32, #tpu.memory_space<vmem>>, %arg3: memref<1x128xf32, #tpu.memory_space<vmem>>) attributes {dimension_semantics = [#tpu.dimension_semantics<parallel>], iteration_bounds = array<i64: 1>, scalar_prefetch = 0 : i64, scratch_operands = 0 : i64, tpu.core_type = #tpu.core_type<tc>, window_params = [{transform_indices = @transform_0, window_bounds = array<i64: 16, 1024>}, {transform_indices = @transform_1, window_bounds = array<i64: 16, 1>}, {transform_indices = @transform_2, window_bounds = array<i64: 1, 128>}]} {
    %c0 = arith.constant 0 : index
    %c0_0 = arith.constant 0 : index
    %0 = vector.load %arg1[%c0, %c0_0] : memref<16x1024xbf16, #tpu.memory_space<vmem>>, vector<16x1024xbf16>
    %1 = arith.extf %0 : vector<16x1024xbf16> to vector<16x1024xf32>
    %c0_1 = arith.constant 0 : index
    %c0_2 = arith.constant 0 : index
    %2 = vector.load %arg2[%c0_1, %c0_2] : memref<16x1xi32, #tpu.memory_space<vmem>>, vector<16x1xi32>
    %3 = tpu.iota {dimensions = array<i32: 1>} : vector<16x1024xi32>
    %4 = vector.broadcast %2 : vector<16x1xi32> to vector<16x1024xi32>
    %5 = arith.cmpi eq, %3, %4 : vector<16x1024xi32>
    %cst = arith.constant 0.000000e+00 : f32
    %6 = vector.broadcast %cst : f32 to vector<16x1024xf32>
    %7 = arith.select %5, %1, %6 : vector<16x1024xi1>, vector<16x1024xf32>
    %cst_3 = arith.constant dense<0.000000e+00> : vector<16xf32>
    %8 = vector.multi_reduction <add>, %7, %cst_3 [1] : vector<16x1024xf32> to vector<16xf32>
    %9 = vector.shape_cast %8 : vector<16xf32> to vector<16x1xf32>
    %cst_4 = arith.constant dense<0xFF800000> : vector<16xf32>
    %10 = vector.multi_reduction <maximumf>, %1, %cst_4 [1] : vector<16x1024xf32> to vector<16xf32>
    %11 = vector.shape_cast %10 : vector<16xf32> to vector<16x1xf32>
    %12 = vector.broadcast %11 : vector<16x1xf32> to vector<16x1024xf32>
    %13 = arith.subf %1, %12 : vector<16x1024xf32>
    %14 = math.exp %13 : vector<16x1024xf32>
    %cst_5 = arith.constant dense<0.000000e+00> : vector<16xf32>
    %15 = vector.multi_reduction <add>, %14, %cst_5 [1] : vector<16x1024xf32> to vector<16xf32>
    %16 = vector.shape_cast %15 : vector<16xf32> to vector<16x1xf32>
    %17 = math.log %16 : vector<16x1xf32>
    %18 = arith.addf %11, %17 : vector<16x1xf32>
    %19 = arith.subf %18, %9 : vector<16x1xf32>
    %cst_6 = arith.constant 0.000000e+00 : f32
    %20 = vector.broadcast %cst_6 : f32 to vector<16x1xf32>
    %21 = arith.maximumf %19, %20 : vector<16x1xf32>
    %cst_7 = arith.constant 0.000000e+00 : f32
    %22 = vector.broadcast %cst_7 : f32 to vector<16x1xf32>
    %23 = arith.subf %22, %21 : vector<16x1xf32>
    %24 = math.exp %23 : vector<16x1xf32>
    %cst_8 = arith.constant 1.000000e+00 : f32
    %25 = vector.broadcast %cst_8 : f32 to vector<16x1xf32>
    %26 = arith.subf %25, %24 : vector<16x1xf32>
    %27 = arith.mulf %26, %26 : vector<16x1xf32>
    %28 = arith.mulf %27, %21 : vector<16x1xf32>
    %c16_i32 = arith.constant 16 : i32
    %29 = arith.muli %arg0, %c16_i32 : i32
    %30 = tpu.iota {dimensions = array<i32: 0>} : vector<16x1xi32>
    %31 = vector.broadcast %29 : i32 to vector<16x1xi32>
    %32 = arith.addi %31, %30 : vector<16x1xi32>
    %c2_i32 = arith.constant 2 : i32
    %33 = vector.broadcast %c2_i32 : i32 to vector<16x1xi32>
    %34 = arith.cmpi slt, %32, %33 : vector<16x1xi32>
    %cst_9 = arith.constant 0.000000e+00 : f32
    %35 = vector.broadcast %cst_9 : f32 to vector<16x1xf32>
    %36 = arith.select %34, %28, %35 : vector<16x1xi1>, vector<16x1xf32>
    %37 = vector.shape_cast %36 : vector<16x1xf32> to vector<1x16x1xf32>
    %cst_10 = arith.constant dense<0.000000e+00> : vector<1xf32>
    %38 = vector.multi_reduction <add>, %37, %cst_10 [1, 2] : vector<1x16x1xf32> to vector<1xf32>
    %39 = vector.shape_cast %38 : vector<1xf32> to vector<1x1x1xf32>
    %40 = vector.extract %39[0, 0, 0] : f32 from vector<1x1x1xf32>
    %41 = vector.broadcast %40 : f32 to vector<1x128xf32>
    %c0_11 = arith.constant 0 : index
    %c0_12 = arith.constant 0 : index
    %42 = vector.load %arg3[%c0_11, %c0_12] : memref<1x128xf32, #tpu.memory_space<vmem>>, vector<1x128xf32>
    tpu.vector_store %arg3[%c0_11, %c0_12], %41 {strides = array<i32>} : memref<1x128xf32, #tpu.memory_space<vmem>>, vector<1x128xf32>,
    return
  }
  func.func @transform_0(%arg0: i32) -> (i32, i32) {
    %c0_i32 = arith.constant 0 : i32
    %c0_i32_0 = arith.constant 0 : i32
    return %arg0, %c0_i32 : i32, i32
  }
  func.func @transform_1(%arg0: i32) -> (i32, i32) {
    %c0_i32 = arith.constant 0 : i32
    %c0_i32_0 = arith.constant 0 : i32
    return %arg0, %c0_i32 : i32, i32
  }
  func.func @transform_2(%arg0: i32) -> (i32, i32) {
    %c0_i32 = arith.constant 0 : i32
    %c0_i32_0 = arith.constant 0 : i32
    return %c0_i32, %arg0 : i32, i32
  }
}

</mosaic_0001>

<bundles_post_ra>
// kernel: tpu_custom_call.1
= control target key start
LH: loop header
LB: loop body
LE: loop exit
PB: predicated region body
PF: predicated region fallthrough
CT: control target
= control target key end

     0   :  { %7 = vsyncpa [#allocation3], 0  ;;  %s942_s0 = inlined_call_operand.hbm [shape: bf16[2,1024], index: 0, kind: input, shape index: {}]   ;;  %s943_s1 = inlined_call_operand.vmem [shape: s32[2,1], index: 1, kind: input, shape index: {}]   ;;  %s944_s2 = inlined_call_operand.hbm [shape: f32[1,128], index: 2, kind: output, shape index: {}]  }
   0x1   :  { %8 = vsyncpa [#allocation4], 0 }
   0x2   :  { %13 = vsyncadd [#allocation3], 896  ;;  %s763_s9 = smov [#allocation2]   ;;  %s715_s13 = scalar_lea.hbm %s942_s0, 128 }
   0x3   :  { %s14_s10 = sshll.u32 %s763_s9, 4  ;;  %p716_p0 = scmp.ne.s32.totalorder %s942_s0, %s715_s13  ;;  %s15_s10 = int_to_ptr.vmem [resolvable:$true] %s14_s10 }
   0x4   :  { %p719_p1 = scmp.lt.u32.totalorder %s715_s13, %s942_s0 }
   0x6   :  { %p721_p2 = pnand %p719_p1, %p716_p0 }
   0x8   :  { %724 = shalt.err (!%p721_p2)
}
   0x9   :  { %s725_s18 = scalar_lea.vmem %s15_s10, 128  ;;  %s729_s19 = scalar_lea.vmem %s15_s10, 1024 }
   0xa   :  { %p726_p3 = scmp.ne.s32.totalorder %s15_s10, %s725_s18  ;;  %p730_p4 = scmp.lt.s32.totalorder %s15_s10, %s15_s10 }
   0xb   :  { %p731_p5 = scmp.lt.s32.totalorder %s729_s19, %s725_s18 }
   0xd   :  { %p732_p6 = por %p731_p5, %p730_p4 }
   0xf   :  { %p733_p7 = pnand %p732_p6, %p726_p3 }
  0x11   :  { %736 = shalt.err (!%p733_p7)
}
  0x12   :  { %s764_s20 = smov 128   ;;  %s765_s21 = smov 8  }
  0x13   :  { %20 = dma.hbm_to_vmem [thread:$0]  %s942_s0, 128, %s15_s10, [#allocation3], %s764_s20, %s764_s20, %s765_s21  }
  0x14   :  { %759 = dma.done.wait [#allocation3], 1024  }
  0x15   :  { %760 = vsyncadd [#allocation3], 4294966272  ;;  %v52_v0 = vlaneseq  ;;  %v766_v1 = vmov 1983009808   ;;  %v767_v3 = vmov 0   ;;  %v26_v6 = vld [vmem:[#allocation2] sm:$0xff] }
  0x16   :  { %v104_v2 = vunpack.c.l.s4 %v766_v1  ;;  %694 = vset.pattern.permute.xlu0 %v767_v3  ;;  %v27_v7 = vld [vmem:[#allocation2 + $0x8] sm:$0xff]  ;;  %v28_v8 = vld [vmem:[#allocation2 + $0x10] sm:$0xff]  ;;  %v29_v10 = vld [vmem:[#allocation2 + $0x18] sm:$0xff]  ;;  %v806_v11 = vunpack.c.l.bf16 %v26_v6  ;;  %v808_v12 = vunpack.c.h.bf16 %v26_v6  ;;  %v768_v51 = vmov 269488144  }
  0x17   :  { %v801_v5 = vshrl.u32 %v52_v0, 7  ;;  %v810_v13 = vunpack.c.l.bf16 %v27_v7  ;;  %v812_v14 = vunpack.c.h.bf16 %v27_v7  ;;  %v814_v15 = vunpack.c.l.bf16 %v28_v8  ;;  %v50_v50 = vld [vmem:[%s943_s1] sm:$0xff]  ;;  %s772_s1 = smov [#allocation5]  }
  0x18   :  { %v105_v4 = vunpack.c.0.s8 %v104_v2  ;;  %v816_v16 = vunpack.c.h.bf16 %v28_v8  ;;  %v818_v17 = vunpack.c.l.bf16 %v29_v10  ;;  %v820_v18 = vunpack.c.h.bf16 %v29_v10  ;;  %s673_s25 = sshll.u32 %s772_s1, 4  ;;  %s674_s25 = int_to_ptr.vmem [resolvable:$true] %s673_s25 }
  0x19   :  { %v99_v19 = vcombine.low %v806_v11, %v810_v13  ;;  %v100_v20 = vcombine.high %v806_v11, %v810_v13  ;;  %v135_v21 = vcombine.low %v808_v12, %v812_v14  ;;  %v136_v22 = vcombine.high %v808_v12, %v812_v14  ;;  %s737_s27 = scalar_lea.vmem %s674_s25, 16  ;;  %s741_s28 = scalar_lea.vmem %s674_s25, 32 }
  0x1a   :  { %v804_v9 = vsub.s32 %v105_v4, %v801_v5  ;;  %v101_v23 = vcombine.low %v814_v15, %v818_v17  ;;  %v102_v24 = vcombine.high %v814_v15, %v818_v17  ;;  %v137_v25 = vcombine.low %v816_v16, %v820_v18  ;;  %p738_p8 = scmp.ne.s32.totalorder %s674_s25, %s737_s27  ;;  %p742_p9 = scmp.lt.s32.totalorder %s674_s25, %s674_s25 }
  0x1b   :  { %v138_v26 = vcombine.high %v816_v16, %v820_v18  ;;  %v314_v52 = vunpack.c.l.s4 %v768_v51  ;;  %v769_v53 = vmov 842150450   ;;  %v770_v55 = vmov 1414812756   ;;  %p743_p10 = scmp.lt.s32.totalorder %s741_s28, %s737_s27 }
  0x1c   :  { %v109_v27 = vrot.slane %v99_v19, %v804_v9  ;;  %v116_v28 = vrot.slane %v100_v20, %v804_v9  ;;  %v145_v29 = vrot.slane %v135_v21, %v804_v9  ;;  %v152_v30 = vrot.slane %v136_v22, %v804_v9 }
  0x1d   :  { %v123_v31 = vrot.slane %v101_v23, %v804_v9  ;;  %v130_v32 = vrot.slane %v102_v24, %v804_v9  ;;  %v159_v33 = vrot.slane %v137_v25, %v804_v9  ;;  %v166_v34 = vrot.slane %v138_v26, %v804_v9  ;;  %p744_p11 = por %p743_p10, %p742_p9 }
  0x1e   :  { %v321_v54 = vunpack.c.l.s4 %v769_v53  ;;  %v328_v56 = vunpack.c.l.s4 %v770_v55  ;;  %v771_v57 = vmov 1987475062   ;;  %v315_v59 = vunpack.c.0.s8 %v314_v52 }
  0x1f   :  { %v846_v35 = vcombine.low %v109_v27, %v123_v31  ;;  %v848_v36 = vcombine.high %v109_v27, %v123_v31  ;;  %v850_v37 = vcombine.low %v116_v28, %v130_v32  ;;  %v852_v38 = vcombine.high %v116_v28, %v130_v32  ;;  %p745_p12 = pnand %p744_p11, %p738_p8 }
  0x20   :  { %v854_v39 = vcombine.low %v145_v29, %v159_v33  ;;  %v856_v40 = vcombine.high %v145_v29, %v159_v33  ;;  %v858_v41 = vcombine.low %v152_v30, %v166_v34  ;;  %v860_v42 = vcombine.high %v152_v30, %v166_v34 }
  0x21   :  { %v293_v43 = vmax.f32 %v846_v35, %v850_v37  ;;  %v294_v44 = vmax.f32 %v848_v36, %v852_v38  ;;  %v335_v58 = vunpack.c.l.s4 %v771_v57  ;;  %v322_v60 = vunpack.c.0.s8 %v321_v54 }
  0x22   :  { %v329_v61 = vunpack.c.0.s8 %v328_v56  ;;  %v318_v63 = vsub.s32 %v315_v59, %v801_v5  ;;  %vm648_vm8 = vcmp.lt.s32.totalorder %v801_v5, 2  ;;  %vm652_vm9 = vcmask 7168  }
  0x23   :  { %v295_v45 = vmax.f32 %v293_v43, %v854_v39  ;;  %v296_v46 = vmax.f32 %v294_v44, %v856_v40  ;;  %v336_v62 = vunpack.c.0.s8 %v335_v58  ;;  %v325_v1 = vsub.s32 %v322_v60, %v801_v5 }
  0x24   :  { %v332_v2 = vsub.s32 %v329_v61, %v801_v5 }
  0x25   :  { %v297_v47 = vmax.f32 %v295_v45, %v858_v41  ;;  %v298_v48 = vmax.f32 %v296_v46, %v860_v42  ;;  %v339_v3 = vsub.s32 %v336_v62, %v801_v5 }
  0x27   :  { %v299_v49 = vmax.f32 %v297_v47, %v298_v48 }
  0x29   :  { %300 = vmax.xlane.f32.xlu0 %v299_v49 }
  0x3f   :  { %62 = vperm.xlu0 %694, %v50_v50  }
  0xb6   :  { %v877_v4 = vpop.xlane.xlu0 %300 }
  0xb7   :  { %v319_v6 = vrot.slane %v877_v4, %v318_v63  ;;  %v326_v7 = vrot.slane %v877_v4, %v325_v1  ;;  %v333_v8 = vrot.slane %v877_v4, %v332_v2  ;;  %v340_v10 = vrot.slane %v877_v4, %v339_v3 }
  0xb9   :  { %v377_v19 = vsub.f32 %v806_v11, %v319_v6  ;;  %v378_v20 = vsub.f32 %v808_v12, %v319_v6  ;;  %v379_v21 = vsub.f32 %v810_v13, %v326_v7  ;;  %v380_v22 = vsub.f32 %v812_v14, %v326_v7 }
  0xba   :  { %v381_v23 = vsub.f32 %v814_v15, %v333_v8  ;;  %v382_v24 = vsub.f32 %v816_v16, %v333_v8  ;;  %v383_v25 = vsub.f32 %v818_v17, %v340_v10  ;;  %v384_v29 = vsub.f32 %v820_v18, %v340_v10 }
  0xbb   :  { %v393_v26 = vmul.f32 1.442695, %v377_v19  ;;  %v395_v27 = vmul.f32 1.442695, %v378_v20  ;;  %v397_v28 = vmul.f32 1.442695, %v379_v21 }
  0xbc   :  { %v399_v30 = vmul.f32 1.442695, %v380_v22  ;;  %v892_v11 = vand.u32 127, %v52_v0  ;;  %v401_v12 = vmul.f32 1.442695, %v381_v23 }
  0xbd   :  { %695 = vpow2.f32 %v393_v26  ;;  %v403_v13 = vmul.f32 1.442695, %v382_v24  ;;  %v405_v14 = vmul.f32 1.442695, %v383_v25  ;;  %v407_v15 = vmul.f32 1.442695, %v384_v29 }
  0xbe   :  { %697 = vpow2.f32 %v395_v27  ;;  %v54_v16 = vadd.s32 128, %v892_v11  ;;  %v895_v17 = vpop.permute.xlu0 %62  ;;  %v55_v18 = vadd.s32 256, %v892_v11  ;;  %v56_v34 = vadd.s32 384, %v892_v11 }
  0xbf   :  { %699 = vpow2.f32 %v397_v28  ;;  %vm67_vm0 = vcmp.eq.s32.totalorder %v892_v11, %v895_v17  ;;  %v57_v48 = vadd.s32 512, %v892_v11  ;;  %v58_v57 = vadd.s32 640, %v892_v11 }
  0xc0   :  { %701 = vpow2.f32 %v399_v30  ;;  %vm68_vm1 = vcmp.eq.s32.totalorder %v54_v16, %v895_v17  ;;  %v259_v31 = vsel %vm67_vm0, %v846_v35, 0.0  ;;  %vm69_vm2 = vcmp.eq.s32.totalorder %v55_v18, %v895_v17 }
  0xc1   :  { %703 = vpow2.f32 %v401_v12  ;;  %v260_v32 = vsel %vm68_vm1, %v848_v36, 0.0  ;;  %v261_v49 = vsel %vm69_vm2, %v850_v37, 0.0  ;;  %vm70_vm3 = vcmp.eq.s32.totalorder %v56_v34, %v895_v17 }
  0xc2   :  { %705 = vpow2.f32 %v403_v13  ;;  %v275_v46 = vadd.f32 %v260_v32, %v259_v31  ;;  %vm71_vm4 = vcmp.eq.s32.totalorder %v57_v48, %v895_v17  ;;  %v262_v58 = vsel %vm70_vm3, %v852_v38, 0.0 }
  0xc3   :  { %707 = vpow2.f32 %v405_v14  ;;  %v59_v1 = vadd.s32 768, %v892_v11  ;;  %vm72_vm5 = vcmp.eq.s32.totalorder %v58_v57, %v895_v17  ;;  %v263_v7 = vsel %vm71_vm4, %v854_v39, 0.0 }
  0xc4   :  { %709 = vpow2.f32 %v407_v15  ;;  %v276_v55 = vadd.f32 %v275_v46, %v261_v49  ;;  %v60_v23 = vadd.s32 896, %v892_v11  ;;  %v264_v24 = vsel %vm72_vm5, %v856_v40, 0.0 }
  0xc5   :  { %vm73_vm6 = vcmp.eq.s32.totalorder %v59_v1, %v895_v17 }
  0xc6   :  { %v277_v2 = vadd.f32 %v276_v55, %v262_v58  ;;  %v265_v12 = vsel %vm73_vm6, %v858_v41, 0.0  ;;  %vm74_vm7 = vcmp.eq.s32.totalorder %v60_v23, %v895_v17 }
  0xc7   :  { %v696_v0 = vpop.eup %695  ;;  %v266_v40 = vsel %vm74_vm7, %v860_v42, 0.0 }
  0xc8   :  { %v698_v33 = vpop.eup %697  ;;  %v278_v22 = vadd.f32 %v277_v2, %v263_v7 }
  0xc9   :  { %v700_v43 = vpop.eup %699 }
  0xca   :  { %v702_v44 = vpop.eup %701  ;;  %v441_v45 = vcombine.low %v696_v0, %v700_v43  ;;  %v442_v51 = vcombine.high %v696_v0, %v700_v43  ;;  %v279_v30 = vadd.f32 %v278_v22, %v264_v24 }
  0xcb   :  { %v704_v47 = vpop.eup %703  ;;  %v477_v56 = vcombine.low %v698_v33, %v702_v44  ;;  %v478_v3 = vcombine.high %v698_v33, %v702_v44 }
  0xcc   :  { %v706_v50 = vpop.eup %705  ;;  %v451_v54 = vrot.slane %v441_v45, %v804_v9  ;;  %v458_v37 = vrot.slane %v442_v51, %v804_v9  ;;  %v280_v16 = vadd.f32 %v279_v30, %v265_v12 }
  0xcd   :  { %v708_v35 = vpop.eup %707  ;;  %v487_v6 = vrot.slane %v477_v56, %v804_v9  ;;  %v494_v25 = vrot.slane %v478_v3, %v804_v9 }
  0xce   :  { %v710_v36 = vpop.eup %709  ;;  %v443_v52 = vcombine.low %v704_v47, %v708_v35  ;;  %v444_v53 = vcombine.high %v704_v47, %v708_v35  ;;  %v281_v0 = vadd.f32 %v280_v16, %v266_v40 }
  0xcf   :  { %v479_v61 = vcombine.low %v706_v50, %v710_v36  ;;  %v480_v8 = vcombine.high %v706_v50, %v710_v36 }
  0xd0   :  { %v465_v59 = vrot.slane %v443_v52, %v804_v9  ;;  %v472_v60 = vrot.slane %v444_v53, %v804_v9 }
  0xd1   :  { %v501_v10 = vrot.slane %v479_v61, %v804_v9  ;;  %v508_v26 = vrot.slane %v480_v8, %v804_v9 }
  0xd2   :  { %v473_v62 = vcombine.low %v451_v54, %v465_v59  ;;  %v474_v63 = vcombine.high %v451_v54, %v465_v59  ;;  %v475_v38 = vcombine.low %v458_v37, %v472_v60  ;;  %v476_v20 = vcombine.high %v458_v37, %v472_v60 }
  0xd3   :  { %v509_v27 = vcombine.low %v487_v6, %v501_v10  ;;  %v510_v28 = vcombine.high %v487_v6, %v501_v10  ;;  %v511_v13 = vcombine.low %v494_v25, %v508_v26  ;;  %v512_v11 = vcombine.high %v494_v25, %v508_v26 }
  0xd4   :  { %v601_v19 = vadd.f32 %v474_v63, %v473_v62 }
  0xd6   :  { %v602_v21 = vadd.f32 %v601_v19, %v475_v38 }
  0xd8   :  { %v603_v39 = vadd.f32 %v602_v21, %v476_v20 }
  0xda   :  { %v604_v29 = vadd.f32 %v603_v39, %v509_v27 }
  0xdc   :  { %v605_v14 = vadd.f32 %v604_v29, %v510_v28 }
  0xde   :  { %v606_v15 = vadd.f32 %v605_v14, %v511_v13 }
  0xe0   :  { %v607_v18 = vadd.f32 %v606_v15, %v512_v11 }
  0xe2   :  { %608 = vadd.xlane.f32.xlu1 %v607_v18 }
  0xe6   :  { %282 = vadd.xlane.f32.xlu1 %v281_v0 }
 0x16f   :  { %v609_v9 = vpop.xlane.xlu1 %608 }
 0x170   :  { %711 = vlog2.f32 %v609_v9 }
 0x173   :  { %v283_v41 = vpop.xlane.xlu1 %282 }
 0x17a   :  { %v712_v31 = vpop.eup %711 }
 0x17b   :  { %v620_v32 = vmul.f32 0.6931472, %v712_v31 }
 0x17d   :  { %v623_v33 = vadd.f32 %v620_v32, %v877_v4 }
 0x17f   :  { %v625_v34 = vsub.f32 %v623_v33, %v283_v41 }
 0x181   :  { %v627_v43 = vmax.f32 %v625_v34, 0.0 }
 0x183   :  { %v629_v44 = vsub.f32 0.0, %v627_v43 }
 0x185   :  { %v631_v17 = vmul.f32 1.442695, %v629_v44 }
 0x187   :  { %713 = vpow2.f32 %v631_v17 }
 0x191   :  { %v714_v45 = vpop.eup %713 }
 0x192   :  { %v635_v46 = vsub.f32 1.0, %v714_v45 }
 0x194   :  { %v637_v47 = vmul.f32 %v635_v46, %v635_v46 }
 0x196   :  { %v639_v42 = vmul.f32 %v637_v47, %v627_v43 }
 0x198   :  { %v650_v48 = vsel %vm648_vm8, %v639_v42, 0.0 }
 0x199   :  { %v653_v49 = vsel %vm652_vm9, %v650_v48, 0.0 }
 0x19a   :  { %656 = vadd.xlane.f32.xlu1 %v653_v49 }
 0x227   :  { %v657_v50 = vpop.xlane.xlu1 %656 }
 0x228   :  { %v658_v51 = vrot.slane %v657_v50, 4 }
 0x22a   :  { %v659_v35 = vadd.f32 %v658_v51, %v657_v50 }
 0x22c   :  { %v660_v4 = vrot.slane %v659_v35, 2 }
 0x22e   :  { %v661_v36 = vadd.f32 %v660_v4, %v659_v35 }
 0x230   :  { %v662_v52 = vrot.slane %v661_v36, 1 }
 0x232   :  { %v663_v53 = vadd.f32 %v662_v52, %v661_v36 }
 0x234   :  { %682 = vpush %v663_v53 }
 0x265   :  { %s683_s26 = spop %682 }
 0x266   :  { %v665_v54 = vstv %s683_s26 }
 0x267   :  { %666 = vst [vmem:[#allocation5] sm:$0x1] %v665_v54 }
 0x268   :  { %748 = shalt.err (!%p745_p12)
}
 0x269   :  { %s749_s3 = scalar_lea.hbm %s944_s2, 16 }
 0x26a   :  { %p750_p13 = scmp.ne.s32.totalorder %s944_s2, %s749_s3  ;;  %p753_p0 = scmp.lt.u32.totalorder %s749_s3, %s944_s2 }
 0x26c   :  { %p755_p1 = pnand %p753_p0, %p750_p13 }
 0x26e   :  { %758 = shalt.err (!%p755_p1)
}
 0x26f   :  { %676 = dma.vmem_to_hbm [thread:$0]  %s674_s25, 16, %s944_s2, [#allocation4]  }
 0x270   :  { %761 = dma.done.wait [#allocation4], 16  }
 0x271   :  { %762 = vsyncadd [#allocation4], 4294967280 }
 0x272   :  { %680 = vsyncpa [#allocation3], 1 }
 0x273   :  { %681 = vsyncpa [#allocation4], 1 }

</bundles_post_ra>
